<compile_context>
chip_gen: v7x
topology: tpu7x:2x2x1
jax: 0.10.0
libtpu: 0.0.40
codegen_flags: <defaults>
</compile_context>

<pallas_src>
import functools

import jax
import jax.numpy as jnp
from jax.experimental import pallas as pl
from jax.experimental.pallas import tpu as pltpu


def _round_up(x, m):
    return ((x + m - 1) // m) * m


def _sum_last_kernel(x_ref, o_ref, acc_ref, *, c, L, tl, l_ragged):
    """Reduce one (tm, tl) tile over its last axis into a (tm, 1) f32
    accumulator; scale by c and cast exactly once on the final L step."""
    k = pl.program_id(1)
    nk = pl.num_programs(1)

    @pl.when(k == 0)
    def _():
        acc_ref[...] = jnp.zeros_like(acc_ref)

    def _accum(vals):
        # f32 accumulation regardless of input dtype (bf16-safe, no-op for
        # f32); the upcast is part of the reduce, not a materialized tile.
        acc_ref[...] += jnp.sum(vals, axis=-1, keepdims=True, dtype=jnp.float32)

    if l_ragged:
        # Only the very last L tile hangs past the array end; its
        # out-of-bounds lanes contain unspecified data, so zero them before
        # reducing.  All earlier steps take the unmasked (cheaper) path.
        @pl.when(k == nk - 1)
        def _():
            lane = jax.lax.broadcasted_iota(jnp.int32, x_ref.shape, 1)
            xv = x_ref[...]
            _accum(jnp.where(k * tl + lane < L, xv, jnp.zeros_like(xv)))

        @pl.when(k != nk - 1)
        def _():
            _accum(x_ref[...])
    else:
        _accum(x_ref[...])

    @pl.when(k == nk - 1)
    def _():
        o_ref[...] = (acc_ref[...] * c).astype(o_ref.dtype)


def _pick_tiles(rows, L, itemsize, *, tm_pref, block_bytes):
    """Choose (tm, tl) so one input block is ~block_bytes and there are >=2
    row tiles whenever possible (v7x dual-TensorCore sharding of the
    'parallel' row axis)."""
    align = max(8, 32 // itemsize)          # 8 for f32, 16 for bf16, 32 for i8
    if rows > tm_pref:
        tm = tm_pref
    elif rows >= 2 * align:
        tm = _round_up((rows + 1) // 2, align)   # two row tiles
    else:
        tm = rows                           # full extent (always legal)

    # Reduction (L) axis: whole extent if it fits the per-buffer budget, else
    # 128-aligned chunks accumulated across the 'arbitrary' grid axis.
    tl_cap = max(128, (block_bytes // (tm * itemsize)) // 128 * 128)
    tl = L if L <= tl_cap else tl_cap
    return tm, tl


def _global_sum_rows(x2d, c, *, tm_pref=512, block_bytes=8 << 20):
    """Sum a (rows, L) slab over L (keepdim) and scale by c via Pallas."""
    rows, L = x2d.shape
    if rows == 0 or L == 0:
        # Sum over an empty axis is 0 (times c).
        return jnp.zeros((rows, 1), dtype=x2d.dtype)

    itemsize = jnp.dtype(x2d.dtype).itemsize
    tm, tl = _pick_tiles(rows, L, itemsize,
                         tm_pref=tm_pref, block_bytes=block_bytes)

    grid = (pl.cdiv(rows, tm), pl.cdiv(L, tl))   # reduction axis last
    l_ragged = (L % tl) != 0

    kernel = functools.partial(
        _sum_last_kernel, c=float(c), L=L, tl=tl, l_ragged=l_ragged)

    out = pl.pallas_call(
        kernel,
        out_shape=jax.ShapeDtypeStruct((rows, 1), x2d.dtype),
        grid_spec=pltpu.PrefetchScalarGridSpec(
            num_scalar_prefetch=0,
            grid=grid,
            in_specs=[pl.BlockSpec((tm, tl), lambda i, k: (i, k))],
            out_specs=pl.BlockSpec((tm, 1), lambda i, k: (i, 0)),
            scratch_shapes=[pltpu.VMEM((tm, 1), jnp.float32)],
        ),
        compiler_params=pltpu.CompilerParams(
            dimension_semantics=("parallel", "arbitrary"),
            vmem_limit_bytes=32 * 1024 * 1024,
        ),
        cost_estimate=pl.CostEstimate(
            flops=rows * L,
            transcendentals=0,
            bytes_accessed=rows * L * itemsize + rows * itemsize,
        ),
    )(x2d)
    return out


def _sum_keepdim(x, c, **tile_kwargs):
    lead, L = x.shape[:-1], x.shape[-1]
    rows = 1
    for d in lead:
        rows *= d
    out2d = _global_sum_rows(x.reshape(rows, L), c, **tile_kwargs)
    return out2d.reshape(lead + (1,))


def global_summation_1d(x1, x2=None, c=1.0, **tile_kwargs):
    """JAX/Pallas equivalent of GlobalSummation1d.forward.

    x1 (and optional x2): (..., L) arrays (e.g. (N, C, L)).  Returns the sum
    over the last axis (keepdim=True) scaled by c.
    """
    y1 = _sum_keepdim(x1, c, **tile_kwargs)
    if x2 is None:
        return y1
    # Two independent launches: launch overhead is microseconds, whereas the
    # old concatenate "fusion" cost a full-bandwidth HBM copy of both inputs.
    y2 = _sum_keepdim(x2, c, **tile_kwargs)
    return (y1, y2)


if __name__ == "__main__":
    key = jax.random.PRNGKey(0)
    k1, k2, k3, k4 = jax.random.split(key, 4)

    # --- primary check: shapes consistent with the 1d module (N=2, C=4, L=16)
    c = 1.0
    x1 = jax.random.normal(k1, (2, 4, 16), dtype=jnp.float32)
    x2 = jax.random.normal(k2, (2, 4, 16), dtype=jnp.float32)

    y1, y2 = global_summation_1d(x1, x2, c=c)
    y1 = jax.block_until_ready(y1)
    y2 = jax.block_until_ready(y2)

    r1 = jnp.sum(x1, axis=-1, keepdims=True) * c
    r2 = jnp.sum(x2, axis=-1, keepdims=True) * c
    assert y1.shape == (2, 4, 1) and y2.shape == (2, 4, 1)
    assert jnp.allclose(y1, r1, atol=1e-5), "x1 mismatch"
    assert jnp.allclose(y2, r2, atol=1e-5), "x2 mismatch"

    # single-argument path
    y_single = jax.block_until_ready(global_summation_1d(x1, c=c))
    assert jnp.allclose(y_single, r1, atol=1e-5)

    # --- row tiling with a ragged last row tile (rows=60 -> two 32-row tiles;
    #     out-of-bounds output rows are clipped by Pallas, no padding copy)
    a1 = jax.random.normal(k3, (2, 30, 48), dtype=jnp.float32)
    z1 = jax.block_until_ready(global_summation_1d(a1, c=0.5))
    assert z1.shape == (2, 30, 1)
    assert jnp.allclose(z1, jnp.sum(a1, -1, keepdims=True) * 0.5,
                        rtol=1e-5, atol=1e-4)

    # --- L tiling with a ragged last L tile: force small blocks so L=300 is
    #     reduced in 3 x 128-lane steps with iota masking on the final step
    b1 = jax.random.normal(k4, (2, 8, 300), dtype=jnp.float32)
    w1 = jax.block_until_ready(
        global_summation_1d(b1, c=2.0, tm_pref=8, block_bytes=8 * 128 * 4))
    assert w1.shape == (2, 8, 1)
    assert jnp.allclose(w1, jnp.sum(b1, -1, keepdims=True) * 2.0,
                        rtol=1e-5, atol=1e-3)

    # --- bf16 inputs (f32 accumulation inside the kernel)
    h1 = jax.random.normal(k3, (2, 4, 64), dtype=jnp.bfloat16)
    v1 = jax.block_until_ready(global_summation_1d(h1, c=1.0))
    ref = jnp.sum(h1.astype(jnp.float32), -1, keepdims=True)
    assert v1.shape == (2, 4, 1)
    assert jnp.allclose(v1.astype(jnp.float32), ref, atol=0.25)

    print("KERNEL_OK")
</pallas_src>

<mosaic_0001>
module attributes {stable_mosaic.version = 11 : i64} {
  func.func @_sum_last_kernel(%arg0: i32, %arg1: i32, %arg2: memref<8x16xf32, #tpu.memory_space<vmem>>, %arg3: memref<8x1xf32, #tpu.memory_space<vmem>>, %arg4: memref<8x1xf32, #tpu.memory_space<vmem>>) attributes {dimension_semantics = [#tpu.dimension_semantics<parallel>, #tpu.dimension_semantics<arbitrary>], iteration_bounds = array<i64: 1, 1>, scalar_prefetch = 0 : i64, scratch_operands = 1 : i64, tpu.core_type = #tpu.core_type<tc>, window_params = [{transform_indices = @transform_0, window_bounds = array<i64: 8, 16>}, {transform_indices = @transform_1, window_bounds = array<i64: 8, 1>}]} {
    %c0_i32 = arith.constant 0 : i32
    %0 = arith.cmpi eq, %arg1, %c0_i32 : i32
    %1 = arith.extui %0 : i1 to i32
    %c0_i32_0 = arith.constant 0 : i32
    %2 = arith.cmpi ne, %1, %c0_i32_0 : i32
    scf.if %2 {
      %cst_8 = arith.constant 0.000000e+00 : f32
      %12 = vector.broadcast %cst_8 : f32 to vector<8x1xf32>
      %c0_9 = arith.constant 0 : index
      %c0_10 = arith.constant 0 : index
      %13 = vector.load %arg4[%c0_9, %c0_10] : memref<8x1xf32, #tpu.memory_space<vmem>>, vector<8x1xf32>
      tpu.vector_store %arg4[%c0_9, %c0_10], %12 {strides = array<i32>} : memref<8x1xf32, #tpu.memory_space<vmem>>, vector<8x1xf32>,
    } else {
    }
    %c0 = arith.constant 0 : index
    %c0_1 = arith.constant 0 : index
    %3 = vector.load %arg2[%c0, %c0_1] : memref<8x16xf32, #tpu.memory_space<vmem>>, vector<8x16xf32>
    %c0_2 = arith.constant 0 : index
    %c0_3 = arith.constant 0 : index
    %4 = vector.load %arg4[%c0_2, %c0_3] : memref<8x1xf32, #tpu.memory_space<vmem>>, vector<8x1xf32>
    %cst = arith.constant dense<0.000000e+00> : vector<8xf32>
    %5 = vector.multi_reduction <add>, %3, %cst [1] : vector<8x16xf32> to vector<8xf32>
    %6 = vector.shape_cast %5 : vector<8xf32> to vector<8x1xf32>
    %7 = arith.addf %4, %6 : vector<8x1xf32>
    %c0_4 = arith.constant 0 : index
    %c0_5 = arith.constant 0 : index
    %8 = vector.load %arg4[%c0_4, %c0_5] : memref<8x1xf32, #tpu.memory_space<vmem>>, vector<8x1xf32>
    tpu.vector_store %arg4[%c0_4, %c0_5], %7 {strides = array<i32>} : memref<8x1xf32, #tpu.memory_space<vmem>>, vector<8x1xf32>,
    %c0_i32_6 = arith.constant 0 : i32
    %9 = arith.cmpi eq, %arg1, %c0_i32_6 : i32
    %10 = arith.extui %9 : i1 to i32
    %c0_i32_7 = arith.constant 0 : i32
    %11 = arith.cmpi ne, %10, %c0_i32_7 : i32
    scf.if %11 {
      %c0_8 = arith.constant 0 : index
      %c0_9 = arith.constant 0 : index
      %12 = vector.load %arg4[%c0_8, %c0_9] : memref<8x1xf32, #tpu.memory_space<vmem>>, vector<8x1xf32>
      %cst_10 = arith.constant 1.000000e+00 : f32
      %13 = vector.broadcast %cst_10 : f32 to vector<8x1xf32>
      %14 = arith.mulf %12, %13 : vector<8x1xf32>
      %c0_11 = arith.constant 0 : index
      %c0_12 = arith.constant 0 : index
      %15 = vector.load %arg3[%c0_11, %c0_12] : memref<8x1xf32, #tpu.memory_space<vmem>>, vector<8x1xf32>
      tpu.vector_store %arg3[%c0_11, %c0_12], %14 {strides = array<i32>} : memref<8x1xf32, #tpu.memory_space<vmem>>, vector<8x1xf32>,
    } else {
    }
    return
  }
  func.func @transform_0(%arg0: i32, %arg1: i32) -> (i32, i32) {
    %c0_i32 = arith.constant 0 : i32
    return %arg0, %arg1 : i32, i32
  }
  func.func @transform_1(%arg0: i32, %arg1: i32) -> (i32, i32) {
    %c0_i32 = arith.constant 0 : i32
    %c0_i32_0 = arith.constant 0 : i32
    return %arg0, %c0_i32 : i32, i32
  }
}

</mosaic_0001>

<bundles_post_ra>
// kernel: tpu_custom_call.1
= control target key start
LH: loop header
LB: loop body
LE: loop exit
PB: predicated region body
PF: predicated region fallthrough
CT: control target
= control target key end

     0   :  { %6 = vsyncpa [#allocation4], 0  ;;  %s71_s6 = smov [#allocation3]   ;;  %s98_s0 = inlined_call_operand.hbm [shape: f32[8,16], index: 0, kind: input, shape index: {}]   ;;  %s99_s1 = inlined_call_operand.vmem [shape: f32[8,1], index: 1, kind: output, shape index: {}]  }
   0x1   :  { %s13_s7 = sshll.u32 %s71_s6, 4  ;;  %s47_s10 = scalar_lea.hbm %s98_s0, 128  ;;  %s14_s7 = int_to_ptr.vmem [resolvable:$true] %s13_s7 }
   0x2   :  { %p48_p0 = scmp.ne.s32.totalorder %s98_s0, %s47_s10  ;;  %p51_p1 = scmp.lt.u32.totalorder %s47_s10, %s98_s0 }
   0x4   :  { %p53_p2 = pnand %p51_p1, %p48_p0 }
   0x6   :  { %56 = shalt.err (!%p53_p2)
}
   0x7   :  { %s57_s15 = scalar_lea.vmem %s14_s7, 128  ;;  %p62_p4 = scmp.lt.s32.totalorder %s14_s7, %s14_s7 }
   0x8   :  { %p58_p3 = scmp.ne.s32.totalorder %s14_s7, %s57_s15  ;;  %p63_p5 = scmp.lt.s32.totalorder %s57_s15, %s57_s15 }
   0xa   :  { %p64_p6 = por %p63_p5, %p62_p4 }
   0xc   :  { %p65_p7 = pnand %p64_p6, %p58_p3 }
   0xe   :  { %68 = shalt.err (!%p65_p7)
}
   0xf   :  { %16 = dma.hbm_to_vmem [thread:$0]  %s98_s0, 128, %s14_s7, [#allocation4]  }
  0x10   :  { %69 = dma.done.wait [#allocation4], 128  }
  0x11   :  { %70 = vsyncadd [#allocation4], 4294967168  ;;  %vm24_vm0 = vcmask 7168   ;;  %v72_v0 = vmov 0.0   ;;  %vm28_vm1 = vcmask 130048   ;;  %v26_v1 = vld [vmem:[#allocation3] sm:$0xff] }
  0x12   :  { %25 = vst.msk [vmem:[#allocation2] sm:$0xff] %vm24_vm0, %v72_v0  ;;  %v29_v2 = vsel %vm28_vm1, %v26_v1, 0.0 }
  0x13   :  { %30 = vadd.xlane.f32.xlu0 %v29_v2 }
  0x19   :  { %v27_v3 = vld [vmem:[#allocation2] sm:$0xff] }
  0xa0   :  { %v31_v4 = vpop.xlane.xlu0 %30 }
  0xa1   :  { %v32_v5 = vadd.f32 %v31_v4, %v27_v3 }
  0xa3   :  { %34 = vst.msk [vmem:[#allocation2] sm:$0xff] %vm24_vm0, %v32_v5 }
  0xaa   :  { %v38_v6 = vld [vmem:[#allocation2] sm:$0xff] }
  0xab   :  { %39 = vst.msk [vmem:[%s99_s1] sm:$0xff] %vm24_vm0, %v38_v6 }
  0xac   :  { %44 = vsyncpa [#allocation4], 1 }

</bundles_post_ra>
